<compile_context>
chip_gen: v5e
topology: v5e:2x2
jax: 0.10.0
libtpu: 0.0.40
codegen_flags: <defaults>
</compile_context>

<pallas_src>
import functools
import math

import jax
import jax.numpy as jnp
from jax import lax
from jax.experimental import pallas as pl
from jax.experimental.pallas import tpu as pltpu


def _round_up(x: int, m: int) -> int:
    return ((x + m - 1) // m) * m


def _fused_qkv_kernel(x_ref, w_ref, b_ref, out_ref, acc_ref, *, compute_dtype):
    """One (tm, tn) output tile of: out = x @ W.T + bias, K-tiled with f32 acc.

    x_ref:   (tm, tk)   activation tile (storage dtype, cast in-kernel)
    w_ref:   (tn, tk)   weight tile in the module's native (N, K) layout
    b_ref:   (1,  tn)   bias tile (f32)
    out_ref: (tm, tn)   output tile
    acc_ref: (tm, tn)   f32 accumulator scratch (persists across the K axis)
    """
    k = pl.program_id(2)

    @pl.when(k == 0)
    def _():
        acc_ref[...] = jnp.zeros_like(acc_ref)

    # In-kernel cast to the MXU compute dtype (bf16 by default for f32 inputs):
    # HBM traffic stays at the storage dtype, matmul runs at full bf16 rate.
    x_tile = x_ref[...].astype(compute_dtype)
    w_tile = w_ref[...].astype(compute_dtype)

    # Contract on the weight's K axis (trans_b matmul) -> no wrapper-side
    # transpose / extra HBM round trip of the weight.
    acc_ref[...] += lax.dot_general(
        x_tile,
        w_tile,
        dimension_numbers=(((1,), (1,)), ((), ())),
        preferred_element_type=jnp.float32,
    )

    # Bias is added exactly once, on the final K step.
    @pl.when(k == pl.num_programs(2) - 1)
    def _():
        out_ref[...] = (acc_ref[...] + b_ref[...]).astype(out_ref.dtype)


@functools.partial(
    jax.jit,
    static_argnames=(
        "q_out_features",
        "kv_out_features",
        "tm_max",
        "tn_max",
        "tk_max",
        "compute_dtype",
    ),
)
def mqa_column_linear_forward(
    x,
    qkv_weight,
    qkv_bias,
    q_out_features,
    kv_out_features,
    tm_max=512,
    tn_max=1024,
    tk_max=1024,
    compute_dtype="auto",
):
    """x: (batch, seq, in_features) -> (q, kv) with shapes
       (batch, seq, q_out_features), (batch, seq, kv_out_features)."""
    batch, seq, in_features = x.shape
    n_out = q_out_features + kv_out_features
    assert qkv_weight.shape == (n_out, in_features)
    assert qkv_bias.shape == (n_out,)

    out_dtype = x.dtype
    if compute_dtype == "auto":
        # bf16 MXU path (f32 accumulation) is 2-4x faster than the multi-pass
        # f32 MXU decomposition on v5e/v6e/v7x. Pass compute_dtype=jnp.float32
        # to force full-precision compute.
        compute_dtype = jnp.bfloat16 if x.dtype == jnp.float32 else x.dtype

    M = batch * seq
    K = in_features
    N = n_out

    # Sublane multiple for the compute dtype (bf16 packs 16 rows per vreg).
    sublane = 16 if jnp.dtype(compute_dtype).itemsize <= 2 else 8

    # MXU-aligned tile sizes, shrunk for small problems.
    tm = min(tm_max, _round_up(M, sublane))
    tk = min(tk_max, _round_up(K, 128))
    n128 = _round_up(N, 128)
    tn = min(tn_max, n128)

    M_pad = _round_up(M, tm)
    # v7x has 2 TensorCores: when the M grid collapses to one tile (decode-like
    # shapes), split N into >=2 parallel tiles so both cores get work.
    if M_pad // tm == 1 and n128 >= 256:
        tn = min(tn, max(128, (n128 // 256) * 128))
    N_pad = _round_up(N, tn)
    K_pad = _round_up(K, tk)

    # ---- layout prep: flatten; keep weight in native (N, K); pad ONLY when
    # the static shapes actually require it (common LLM shapes skip this). ----
    x2d = x.reshape(M, K)
    w2d = qkv_weight
    bias = qkv_bias.astype(jnp.float32)

    if (M_pad, K_pad) != (M, K):
        x2d = jnp.pad(x2d, ((0, M_pad - M), (0, K_pad - K)))
    if (N_pad, K_pad) != (N, K):
        w2d = jnp.pad(w2d, ((0, N_pad - N), (0, K_pad - K)))
    if N_pad != N:
        bias = jnp.pad(bias, (0, N_pad - N))
    bias2d = bias.reshape(1, N_pad)

    grid = (M_pad // tm, N_pad // tn, K_pad // tk)

    itemsize_x = jnp.dtype(x.dtype).itemsize
    itemsize_w = jnp.dtype(qkv_weight.dtype).itemsize
    itemsize_o = jnp.dtype(out_dtype).itemsize

    # Double-buffered x / w / out tiles + f32 accumulator + bias.
    vmem_bytes = (
        2 * tm * tk * itemsize_x
        + 2 * tn * tk * itemsize_w
        + 2 * tm * tn * itemsize_o
        + tm * tn * 4
        + 2 * tn * 4
    )
    # Leave headroom, but stay well inside v7x's 64 MiB physical VMEM.
    vmem_limit = int(min(max(vmem_bytes * 3 // 2, 32 * 1024 * 1024),
                         56 * 1024 * 1024))

    cost = pl.CostEstimate(
        flops=2 * M_pad * N_pad * K_pad,
        transcendentals=0,
        bytes_accessed=(
            M_pad * K_pad * itemsize_x
            + N_pad * K_pad * itemsize_w
            + M_pad * N_pad * itemsize_o
        ),
    )

    kernel = functools.partial(_fused_qkv_kernel, compute_dtype=compute_dtype)

    qkv_padded = pl.pallas_call(
        kernel,
        out_shape=jax.ShapeDtypeStruct((M_pad, N_pad), out_dtype),
        grid_spec=pltpu.PrefetchScalarGridSpec(
            num_scalar_prefetch=0,
            grid=grid,
            in_specs=[
                pl.BlockSpec((tm, tk), lambda i, j, k: (i, k)),   # x tile
                pl.BlockSpec((tn, tk), lambda i, j, k: (j, k)),   # weight (N, K)
                pl.BlockSpec((1, tn), lambda i, j, k: (0, j)),    # bias tile
            ],
            out_specs=pl.BlockSpec((tm, tn), lambda i, j, k: (i, j)),
            scratch_shapes=[pltpu.VMEM((tm, tn), jnp.float32)],
        ),
        compiler_params=pltpu.CompilerParams(
            # M / N shard across cores (megacore on v7x); K is the reduction.
            dimension_semantics=("parallel", "parallel", "arbitrary"),
            vmem_limit_bytes=vmem_limit,
        ),
        cost_estimate=cost,
    )(x2d, w2d, bias2d)

    qkv = qkv_padded[:M, :N]
    q = qkv[:, :q_out_features].reshape(batch, seq, q_out_features)
    kv = qkv[:, q_out_features:].reshape(batch, seq, kv_out_features)
    return q, kv


def init_params(key, in_features, q_out_features, kv_out_features, dtype=jnp.float32):
    """Deterministic re-implementation of MQAColumnLinears.reset_parameters
    (kaiming_uniform_(a=sqrt(5)) on the coalesced weight, uniform bias)."""
    n_out = q_out_features + kv_out_features
    k_w, k_b = jax.random.split(key)
    fan_in = in_features
    # kaiming_uniform with a=sqrt(5): bound = sqrt(6 / ((1 + a^2) * fan_in)) = 1/sqrt(fan_in)
    w_bound = 1.0 / math.sqrt(fan_in)
    qkv_weight = jax.random.uniform(
        k_w, (n_out, in_features), dtype=dtype, minval=-w_bound, maxval=w_bound)
    b_bound = 1.0 / math.sqrt(fan_in)
    qkv_bias = jax.random.uniform(
        k_b, (n_out,), dtype=dtype, minval=-b_bound, maxval=b_bound)
    return qkv_weight, qkv_bias


if __name__ == "__main__":
    # Small shapes consistent with the module (tp world_size == 1):
    #   in_features=32, q_out_features=64, kv_out_features=16 (2 * head_dim)
    batch, seq = 2, 8
    in_features = 32
    q_out_features = 64
    kv_out_features = 16

    key = jax.random.PRNGKey(0)
    k_x, k_p = jax.random.split(key)

    x = jax.random.normal(k_x, (batch, seq, in_features), dtype=jnp.float32)
    qkv_weight, qkv_bias = init_params(k_p, in_features, q_out_features, kv_out_features)

    # Reference in plain JAX (F.linear semantics).
    qkv_ref = jnp.einsum("bsk,nk->bsn", x, qkv_weight) + qkv_bias
    q_ref = qkv_ref[..., :q_out_features]
    kv_ref = qkv_ref[..., q_out_features:]

    # 1) Default path: bf16 MXU compute with f32 accumulation (mixed precision).
    q, kv = mqa_column_linear_forward(
        x, qkv_weight, qkv_bias, q_out_features, kv_out_features)
    q = jax.block_until_ready(q)
    kv = jax.block_until_ready(kv)
    assert q.shape == (batch, seq, q_out_features)
    assert kv.shape == (batch, seq, kv_out_features)
    assert jnp.allclose(q, q_ref, atol=5e-2, rtol=5e-2)
    assert jnp.allclose(kv, kv_ref, atol=5e-2, rtol=5e-2)

    # 2) Full-precision path: exercises the same kernel structure at f32.
    q32, kv32 = mqa_column_linear_forward(
        x, qkv_weight, qkv_bias, q_out_features, kv_out_features,
        compute_dtype=jnp.float32)
    q32 = jax.block_until_ready(q32)
    kv32 = jax.block_until_ready(kv32)
    assert jnp.allclose(q32, q_ref, atol=1e-4, rtol=1e-4)
    assert jnp.allclose(kv32, kv_ref, atol=1e-4, rtol=1e-4)

    print("KERNEL_OK")
</pallas_src>

<mosaic_0001>
module attributes {stable_mosaic.version = 11 : i64} {
  func.func @_fused_qkv_kernel(%arg0: i32, %arg1: i32, %arg2: i32, %arg3: memref<16x128xf32, #tpu.memory_space<vmem>>, %arg4: memref<128x128xf32, #tpu.memory_space<vmem>>, %arg5: memref<1x128xf32, #tpu.memory_space<vmem>>, %arg6: memref<16x128xf32, #tpu.memory_space<vmem>>, %arg7: memref<16x128xf32, #tpu.memory_space<vmem>>) attributes {dimension_semantics = [#tpu.dimension_semantics<parallel>, #tpu.dimension_semantics<parallel>, #tpu.dimension_semantics<arbitrary>], iteration_bounds = array<i64: 1, 1, 1>, scalar_prefetch = 0 : i64, scratch_operands = 1 : i64, tpu.core_type = #tpu.core_type<tc>, window_params = [{transform_indices = @transform_0, window_bounds = array<i64: 16, 128>}, {transform_indices = @transform_1, window_bounds = array<i64: 128, 128>}, {transform_indices = @transform_2, window_bounds = array<i64: 1, 128>}, {transform_indices = @transform_3, window_bounds = array<i64: 16, 128>}]} {
    %c0_i32 = arith.constant 0 : i32
    %0 = arith.cmpi eq, %arg2, %c0_i32 : i32
    %1 = arith.extui %0 : i1 to i32
    %c0_i32_0 = arith.constant 0 : i32
    %2 = arith.cmpi ne, %1, %c0_i32_0 : i32
    scf.if %2 {
      %cst_10 = arith.constant 0.000000e+00 : f32
      %14 = vector.broadcast %cst_10 : f32 to vector<16x128xf32>
      %c0_11 = arith.constant 0 : index
      %c0_12 = arith.constant 0 : index
      %15 = vector.load %arg7[%c0_11, %c0_12] : memref<16x128xf32, #tpu.memory_space<vmem>>, vector<16x128xf32>
      tpu.vector_store %arg7[%c0_11, %c0_12], %14 {strides = array<i32>} : memref<16x128xf32, #tpu.memory_space<vmem>>, vector<16x128xf32>,
    } else {
    }
    %c0 = arith.constant 0 : index
    %c0_1 = arith.constant 0 : index
    %3 = vector.load %arg3[%c0, %c0_1] : memref<16x128xf32, #tpu.memory_space<vmem>>, vector<16x128xf32>
    %4 = arith.truncf %3 : vector<16x128xf32> to vector<16x128xbf16>
    %c0_2 = arith.constant 0 : index
    %c0_3 = arith.constant 0 : index
    %5 = vector.load %arg4[%c0_2, %c0_3] : memref<128x128xf32, #tpu.memory_space<vmem>>, vector<128x128xf32>
    %6 = arith.truncf %5 : vector<128x128xf32> to vector<128x128xbf16>
    %c0_4 = arith.constant 0 : index
    %c0_5 = arith.constant 0 : index
    %7 = vector.load %arg7[%c0_4, %c0_5] : memref<16x128xf32, #tpu.memory_space<vmem>>, vector<16x128xf32>
    %cst = arith.constant dense<0.000000e+00> : vector<16x128xf32>
    %8 = tpu.matmul %4, %6, %cst {dimension_numbers = #tpu.dot_dimension_numbers<[1], [1], [0], [0], [0, 0, 1, 0], [], []>} : vector<16x128xbf16>, vector<128x128xbf16>, vector<16x128xf32> -> vector<16x128xf32>
    %9 = arith.addf %7, %8 : vector<16x128xf32>
    %c0_6 = arith.constant 0 : index
    %c0_7 = arith.constant 0 : index
    %10 = vector.load %arg7[%c0_6, %c0_7] : memref<16x128xf32, #tpu.memory_space<vmem>>, vector<16x128xf32>
    tpu.vector_store %arg7[%c0_6, %c0_7], %9 {strides = array<i32>} : memref<16x128xf32, #tpu.memory_space<vmem>>, vector<16x128xf32>,
    %c0_i32_8 = arith.constant 0 : i32
    %11 = arith.cmpi eq, %arg2, %c0_i32_8 : i32
    %12 = arith.extui %11 : i1 to i32
    %c0_i32_9 = arith.constant 0 : i32
    %13 = arith.cmpi ne, %12, %c0_i32_9 : i32
    scf.if %13 {
      %c0_10 = arith.constant 0 : index
      %c0_11 = arith.constant 0 : index
      %14 = vector.load %arg7[%c0_10, %c0_11] : memref<16x128xf32, #tpu.memory_space<vmem>>, vector<16x128xf32>
      %c0_12 = arith.constant 0 : index
      %c0_13 = arith.constant 0 : index
      %15 = vector.load %arg5[%c0_12, %c0_13] : memref<1x128xf32, #tpu.memory_space<vmem>>, vector<1x128xf32>
      %16 = vector.broadcast %15 : vector<1x128xf32> to vector<16x128xf32>
      %17 = arith.addf %14, %16 : vector<16x128xf32>
      %c0_14 = arith.constant 0 : index
      %c0_15 = arith.constant 0 : index
      %18 = vector.load %arg6[%c0_14, %c0_15] : memref<16x128xf32, #tpu.memory_space<vmem>>, vector<16x128xf32>
      tpu.vector_store %arg6[%c0_14, %c0_15], %17 {strides = array<i32>} : memref<16x128xf32, #tpu.memory_space<vmem>>, vector<16x128xf32>,
    } else {
    }
    return
  }
  func.func @transform_0(%arg0: i32, %arg1: i32, %arg2: i32) -> (i32, i32) {
    %c0_i32 = arith.constant 0 : i32
    return %arg0, %arg2 : i32, i32
  }
  func.func @transform_1(%arg0: i32, %arg1: i32, %arg2: i32) -> (i32, i32) {
    %c0_i32 = arith.constant 0 : i32
    return %arg1, %arg2 : i32, i32
  }
  func.func @transform_2(%arg0: i32, %arg1: i32, %arg2: i32) -> (i32, i32) {
    %c0_i32 = arith.constant 0 : i32
    %c0_i32_0 = arith.constant 0 : i32
    return %c0_i32, %arg1 : i32, i32
  }
  func.func @transform_3(%arg0: i32, %arg1: i32, %arg2: i32) -> (i32, i32) {
    %c0_i32 = arith.constant 0 : i32
    return %arg0, %arg1 : i32, i32
  }
}

</mosaic_0001>

<bundles_post_ra>
// kernel: mqa_column_linear_forward.1
= control target key start
LH: loop header
LB: loop body
LE: loop exit
PB: predicated region body
PF: predicated region fallthrough
CT: control target
= control target key end

     0   :  { %s168_s1 = inlined_call_operand.vmem [shape: f32[128,128], index: 1, kind: input, shape index: {}]   ;;  %s169_s2 = inlined_call_operand.vmem [shape: f32[1,128], index: 2, kind: input, shape index: {}]   ;;  %s170_s0 = inlined_call_operand.vmem [shape: f32[16,128], index: 0, kind: input, shape index: {}]   ;;  %s171_s3 = inlined_call_operand.vmem [shape: f32[16,128], index: 3, kind: output, shape index: {}]  }
   0x1   :  { %v37_v0 = vld [vmem:[%s168_s1 + $0x70] sm:$0xff]  ;;  %v38_v1 = vld [vmem:[%s168_s1 + $0x78] sm:$0xff]  ;;  %v35_v3 = vld [vmem:[%s168_s1 + $0x60] sm:$0xff] }
   0x2   :  { %v46_v2 = vpack.c.bf16 %v38_v1, %v37_v0  ;;  %v36_v4 = vld [vmem:[%s168_s1 + $0x68] sm:$0xff]  ;;  %v33_v6 = vld [vmem:[%s168_s1 + $0x50] sm:$0xff]  ;;  %v34_v7 = vld [vmem:[%s168_s1 + $0x58] sm:$0xff] }
   0x3   :  { %v45_v5 = vpack.c.bf16 %v36_v4, %v35_v3  ;;  %v44_v8 = vpack.c.bf16 %v34_v7, %v33_v6  ;;  %v31_v9 = vld [vmem:[%s168_s1 + $0x40] sm:$0xff]  ;;  %v32_v10 = vld [vmem:[%s168_s1 + $0x48] sm:$0xff]  ;;  %v29_v12 = vld [vmem:[%s168_s1 + $0x30] sm:$0xff] }
   0x4   :  { %49 = vmatpush.bf16.xpose.msra.mxu0 %v46_v2  ;;  %v43_v11 = vpack.c.bf16 %v32_v10, %v31_v9  ;;  %v30_v13 = vld [vmem:[%s168_s1 + $0x38] sm:$0xff]  ;;  %v27_v15 = vld [vmem:[%s168_s1 + $0x20] sm:$0xff]  ;;  %v28_v16 = vld [vmem:[%s168_s1 + $0x28] sm:$0xff] }
   0x5   :  { %v42_v14 = vpack.c.bf16 %v30_v13, %v29_v12  ;;  %v41_v17 = vpack.c.bf16 %v28_v16, %v27_v15  ;;  %v25_v18 = vld [vmem:[%s168_s1 + $0x10] sm:$0xff]  ;;  %v26_v19 = vld [vmem:[%s168_s1 + $0x18] sm:$0xff]  ;;  %v23_v21 = vld [vmem:[%s168_s1] sm:$0xff] }
   0x6   :  { %v40_v20 = vpack.c.bf16 %v26_v19, %v25_v18  ;;  %v24_v22 = vld [vmem:[%s168_s1 + $0x8] sm:$0xff]  ;;  %v20_v24 = vld [vmem:[%s170_s0] sm:$0xff] }
   0x7   :  { %v39_v23 = vpack.c.bf16 %v24_v22, %v23_v21  ;;  %v21_v25 = vld [vmem:[%s170_s0 + $0x8] sm:$0xff]  ;;  %v84_v27 = vld [vmem:[%s169_s2] ss:$0 sm:$0xff] }
   0x8   :  { %v22_v26 = vpack.c.bf16 %v21_v25, %v20_v24 }
   0xc   :  { %50 = vmatpush.bf16.xpose.msra.mxu0 %v45_v5 }
  0x14   :  { %51 = vmatpush.bf16.xpose.msra.mxu0 %v44_v8 }
  0x1c   :  { %52 = vmatpush.bf16.xpose.msra.mxu0 %v43_v11 }
  0x24   :  { %53 = vmatpush.bf16.xpose.msra.mxu0 %v42_v14 }
  0x2c   :  { %54 = vmatpush.bf16.xpose.msra.mxu0 %v41_v17 }
  0x34   :  { %55 = vmatpush.bf16.xpose.msra.mxu0 %v40_v20 }
  0x3c   :  { %56 = vmatpush.bf16.xpose.msra.mxu0 %v39_v23 }
  0x43   :  { %57 = vmatmul.bf16.vlgmr.msra.gmra.mxu0 %v22_v26 }
  0xc0   :  { %v58_v28 = vpop.f32.mrf.mxu0 }
  0xc1   :  { %v76_v29 = vadd.f32 %v84_v27, %v58_v28 }
  0xc3   :  { %78 = vst [vmem:[%s171_s3] sm:$0xff] %v76_v29 }
  0xc8   :  { %v60_v30 = vpop.f32.mrf.mxu0 }
  0xc9   :  { %v77_v31 = vadd.f32 %v84_v27, %v60_v30 }
  0xcb   :  { %79 = vst [vmem:[%s171_s3 + $0x8] sm:$0xff] %v77_v31 }

</bundles_post_ra>
